<compile_context>
chip_gen: v6e
topology: v6e:2x2x1
jax: 0.10.0
libtpu: 0.0.40
codegen_flags: <defaults>
</compile_context>

<pallas_src>
import jax
import jax.numpy as jnp
from jax.experimental import pallas as pl
from jax.experimental.pallas import tpu as pltpu


def _resolve_size(total, size):
    """Resolve a single -1 in `size`, matching torch.Tensor.view semantics."""
    if isinstance(size, int):
        size = (size,)
    size = tuple(int(s) for s in size)
    if size.count(-1) > 1:
        raise ValueError("only one dimension can be inferred")
    if -1 in size:
        known = 1
        for s in size:
            if s != -1:
                known *= s
        if known == 0 or total % known != 0:
            raise ValueError(f"shape {size} is invalid for input of size {total}")
        size = tuple(total // known if s == -1 else s for s in size)
    else:
        prod = 1
        for s in size:
            prod *= s
        if prod != total:
            raise ValueError(f"shape {size} is invalid for input of size {total}")
    return size


# Widest lane-dense staging widths first (all multiples of 128).
_LANE_CHOICES = (4096, 2048, 1024, 512, 384, 256, 128)
_MAX_DMAS_IN_FLIGHT = 4  # 2-4 DMAs in flight is enough to saturate HBM BW.


def _materialized_view(x, size):
    """Forced copy: chunked HBM->HBM DMA (no VMEM staging), then free reshape."""
    total = x.size
    itemsize = jnp.dtype(x.dtype).itemsize

    lane = next((c for c in _LANE_CHOICES if total % c == 0), None)
    if lane is None:
        # Irregular element count (not a multiple of 128): a single whole-array
        # DMA in the target shape. No pad / trailing slice — one HBM pass only.
        staged = x.reshape(size)
        starts, sizes = [0], [staged.shape[0]]
        needs_reshape = False
    else:
        rows = total // lane
        staged = x.reshape(rows, lane)
        needs_reshape = True
        # Dtype-aware sublane granularity (8 f32, 16 bf16, 32 int8/fp8).
        # TODO(synk): sub-byte dtypes (int4/fp4) need different sublane handling.
        sub = max(8, 32 // max(itemsize, 1))
        if rows < _MAX_DMAS_IN_FLIGHT * sub:
            starts, sizes = [0], [rows]
        else:
            # Sublane-aligned chunks that exactly cover `rows`: every DMA is
            # fully useful and the writeback is never ragged/masked.
            base = (rows // _MAX_DMAS_IN_FLIGHT) // sub * sub
            starts = [i * base for i in range(_MAX_DMAS_IN_FLIGHT)]
            sizes = [base] * (_MAX_DMAS_IN_FLIGHT - 1) + [
                rows - base * (_MAX_DMAS_IN_FLIGHT - 1)
            ]

    n = len(starts)
    dim0 = staged.shape[0]

    def copy_kernel(x_hbm, o_hbm, sems):
        # Raw HBM refs: issue all chunk DMAs, then wait. The DMA engines move
        # the bytes; there is no VMEM round trip and no vld/vst slot work.
        copies = []
        for c in range(n):
            if starts[c] == 0 and sizes[c] == dim0:
                src, dst = x_hbm, o_hbm          # whole-ref copy
            else:
                sl = pl.ds(starts[c], sizes[c])  # static, sublane-aligned
                src, dst = x_hbm.at[sl], o_hbm.at[sl]
            copies.append(pltpu.make_async_copy(src, dst, sems.at[c]))
        for cp in copies:
            cp.start()
        for cp in copies:
            cp.wait()

    # TODO(synk): on v7x, splitting the chunk range over both TensorCores via
    # pl.core_map(pltpu.create_tensorcore_mesh(...)) would engage both cores'
    # DMA queues; kept single-invocation here for v5e/v6e/v7x portability.
    out = pl.pallas_call(
        copy_kernel,
        out_shape=jax.ShapeDtypeStruct(staged.shape, staged.dtype),
        in_specs=[pl.BlockSpec(memory_space=pl.ANY)],
        out_specs=pl.BlockSpec(memory_space=pl.ANY),
        scratch_shapes=[pltpu.SemaphoreType.DMA((n,))],
        # Output aliases the input buffer: no second full-size HBM allocation.
        input_output_aliases={0: 0},
        compiler_params=pltpu.CompilerParams(has_side_effects=True),
    )(staged)

    return out.reshape(size) if needs_reshape else out


def pallas_view(x, size, *, materialize=False):
    """Reproduces `tensor.view(size)` (row-major / C-contiguous reshape).

    Default path is metadata-only (a contiguous reshape lowers to a bitcast:
    zero HBM traffic). Set materialize=True to force an explicit HBM->HBM copy
    through the Pallas DMA kernel.
    """
    total = x.size
    size = _resolve_size(total, size)
    if not materialize or total == 0 or len(size) == 0:
        return x.reshape(size)
    return _materialized_view(x, size)


class View:
    """Drop-in equivalent of the PyTorch View(nn.Module)."""

    def __init__(self, size):
        self.size = size

    def __call__(self, tensor):
        return pallas_view(tensor, self.size)


if __name__ == "__main__":
    key = jax.random.PRNGKey(0)

    # Typical autoencoder usage: flatten conv features (B, C, H, W) -> (B, C*H*W).
    B, C, H, W = 2, 4, 16, 16
    x = jax.random.normal(key, (B, C, H, W), dtype=jnp.float32)  # NCHW
    ref = x.reshape(B, C * H * W)

    # 1) Default (zero-copy) path — the module's forward.
    view = View((-1, C * H * W))
    y0 = jax.block_until_ready(view(x))
    assert y0.shape == (B, C * H * W) and y0.dtype == x.dtype
    assert bool(jnp.array_equal(y0, ref))

    # 2) Forced-materialization Pallas path (HBM->HBM DMA copy kernel), jitted
    #    so input_output_aliases resolves to intra-computation aliasing.
    copy_fn = jax.jit(lambda t: pallas_view(t, (-1, C * H * W), materialize=True))
    y1 = jax.block_until_ready(copy_fn(x))
    assert y1.shape == (B, C * H * W) and y1.dtype == x.dtype
    assert bool(jnp.array_equal(y1, ref))

    # 3) Larger input exercising the 4-DMAs-in-flight chunked path.
    x2 = jax.random.normal(jax.random.PRNGKey(1), (64, 16, 16, 16), dtype=jnp.float32)
    copy_fn2 = jax.jit(lambda t: pallas_view(t, (64, -1), materialize=True))
    y2 = jax.block_until_ready(copy_fn2(x2))
    assert bool(jnp.array_equal(y2, x2.reshape(64, 16 * 16 * 16)))

    # 4) Irregular element count (not a multiple of 128): single whole-array DMA.
    x3 = jax.random.normal(jax.random.PRNGKey(2), (3, 5, 7), dtype=jnp.float32)
    copy_fn3 = jax.jit(lambda t: pallas_view(t, (5, 21), materialize=True))
    y3 = jax.block_until_ready(copy_fn3(x3))
    assert bool(jnp.array_equal(y3, x3.reshape(5, 21)))

    print("KERNEL_OK")
</pallas_src>

<mosaic_0001>
module attributes {stable_mosaic.version = 11 : i64} {
  func.func @copy_kernel(%arg0: memref<1x2048xf32, #tpu.memory_space<any>>, %arg1: memref<1x2048xf32, #tpu.memory_space<any>>, %arg2: memref<1x!tpu.dma_semaphore, #tpu.memory_space<semaphore_mem>>) attributes {dimension_semantics = [], scalar_prefetch = 0 : i64, scratch_operands = 1 : i64, tpu.core_type = #tpu.core_type<tc>} {
    %c0_i32 = arith.constant 0 : i32
    %0 = tpu.memref_slice %arg2[%c0_i32] : memref<1x!tpu.dma_semaphore, #tpu.memory_space<semaphore_mem>> -> memref<1x!tpu.dma_semaphore, #tpu.memory_space<semaphore_mem>>
    %1 = tpu.memref_squeeze %0 : memref<1x!tpu.dma_semaphore, #tpu.memory_space<semaphore_mem>> -> memref<!tpu.dma_semaphore, #tpu.memory_space<semaphore_mem>>
    tpu.enqueue_dma source(%arg0 : memref<1x2048xf32, #tpu.memory_space<any>>) target(%arg1 : memref<1x2048xf32, #tpu.memory_space<any>>) target_semaphore(%1 : memref<!tpu.dma_semaphore, #tpu.memory_space<semaphore_mem>>)
    %c0_i32_0 = arith.constant 0 : i32
    %2 = tpu.memref_slice %arg2[%c0_i32_0] : memref<1x!tpu.dma_semaphore, #tpu.memory_space<semaphore_mem>> -> memref<1x!tpu.dma_semaphore, #tpu.memory_space<semaphore_mem>>
    %3 = tpu.memref_squeeze %2 : memref<1x!tpu.dma_semaphore, #tpu.memory_space<semaphore_mem>> -> memref<!tpu.dma_semaphore, #tpu.memory_space<semaphore_mem>>
    tpu.wait_dma2 semaphore(%3 : memref<!tpu.dma_semaphore, #tpu.memory_space<semaphore_mem>>) src(%arg0 : memref<1x2048xf32, #tpu.memory_space<any>>) dst(%arg1 : memref<1x2048xf32, #tpu.memory_space<any>>)
    return
  }
}

</mosaic_0001>

<bundles_post_ra>
// kernel: _lambda_.1
= control target key start
LH: loop header
LB: loop body
LE: loop exit
PB: predicated region body
PF: predicated region fallthrough
CT: control target
= control target key end

     0   :  { %s93_s0 = inlined_call_operand.vmem [shape: f32[1,2048], index: 0, kind: input, shape index: {}, may-alias: {0,1}]   ;;  %s94_s1 = inlined_call_operand.vmem [shape: f32[1,2048], index: 1, kind: output, shape index: {}, may-alias: {0,1}]  }
   0x1   :  { %v39_v0 = vld [vmem:[%s93_s0] sm:$0xff]  ;;  %v41_v1 = vld [vmem:[%s93_s0 + $0x8] sm:$0xff] }
   0x2   :  { %40 = vst [vmem:[%s94_s1] sm:$0xff] %v39_v0  ;;  %42 = vst [vmem:[%s94_s1 + $0x8] sm:$0xff] %v41_v1 }
   0x3   :  { %50 = vsyncadd [#allocation2], 256 }
   0x4   :  { %69 = dma.done.wait [#allocation2], 256 }
   0x5   :  { %70 = vsyncadd [#allocation2], 4294967040 }
   0x6   :  { %54 = vsyncmov [#allocation2] }
   0x9   :  { %s55_s14 = vpop.sfrf %54 }
   0xa   :  { %p68_p0 = scmp.ne.s32.totalorder %s55_s14, 0 }
   0xc   :  { %59 = shalt.err (%p68_p0)  }

</bundles_post_ra>
